<compile_context>
chip_gen: v5e
topology: v5e:2x2
jax: 0.10.0
libtpu: 0.0.40
codegen_flags: <defaults>
</compile_context>

<pallas_src>
import jax
import jax.numpy as jnp
from jax.experimental import pallas as pl
from jax.experimental.pallas import tpu as pltpu


def _round_up(x, m):
    return (x + m - 1) // m * m


def _controller_kernel(eps_ref, x_ref, w_ref, b_ref, u_ref, out_ref):
    # Linear: [tb, H] @ [H, O] + [1, O]  (MXU, f32 accumulation).
    logits = jnp.dot(x_ref[...], w_ref[...],
                     preferred_element_type=jnp.float32) + b_ref[...]

    # Sigmoid as a single tanh (one EUP op) + explore/exploit mix.
    eps = eps_ref[0]
    probs = 0.5 * (jnp.tanh(0.5 * logits) + 1.0)
    probs = (1.0 - eps) * probs + eps * 0.5

    # Bernoulli(probs): compare against precomputed uniforms u ~ U[0, 1).
    halt = (u_ref[...] < probs).astype(jnp.float32)
    out_ref[0] = halt                       # halt

    log_p = jnp.log(probs)
    out_ref[2] = -log_p                     # -log(probs)

    log_1mp = jnp.log(1.0 - probs)
    out_ref[1] = jnp.where(halt > 0.5, log_p, log_1mp)   # log_pi


def controller_forward(h_t, weight, bias, key, eps=0.0, *, block_b=512):
    """h_t: [B, H] f32, weight: [H, O], bias: [O], key: jax PRNG key.

    Returns (halt, log_pi, neg_log_probs), each [B, O] float32.
    """
    B, H = h_t.shape
    Hw, O = weight.shape
    assert Hw == H

    # Sublane-aligned batch tile; Pallas handles a partial last block.
    tb = min(_round_up(block_b, 8), _round_up(B, 8))
    nb = pl.cdiv(B, tb)

    # Uniform randoms for the Bernoulli draw (streamed tile-by-tile).
    u = jax.random.uniform(key, (B, O), jnp.float32)

    eps_arr = jnp.asarray([eps], dtype=jnp.float32)
    b2 = bias.reshape(1, O)

    # VMEM budget from the actual footprint (double-buffered streaming tiles
    # + resident weight/bias) with generous headroom.
    tile_bytes = 4 * (tb * H + tb * O + 3 * tb * O)
    resident_bytes = 4 * (H * O + O)
    vmem_limit = max(8 << 20, min(64 << 20,
                                  2 * tile_bytes + resident_bytes + (4 << 20)))

    out = pl.pallas_call(
        _controller_kernel,
        out_shape=jax.ShapeDtypeStruct((3, B, O), jnp.float32),
        grid=(nb,),
        in_specs=[
            pl.BlockSpec(memory_space=pltpu.MemorySpace.SMEM),   # eps scalar
            pl.BlockSpec((tb, H), lambda i: (i, 0)),             # x tile (pipelined)
            pl.BlockSpec((H, O), lambda i: (0, 0)),              # weight (resident)
            pl.BlockSpec((1, O), lambda i: (0, 0)),              # bias (resident)
            pl.BlockSpec((tb, O), lambda i: (i, 0)),             # uniforms tile
        ],
        out_specs=pl.BlockSpec((3, tb, O), lambda i: (0, i, 0)),  # packed outputs
        compiler_params=pltpu.CompilerParams(
            dimension_semantics=("parallel",),
            vmem_limit_bytes=int(vmem_limit),
        ),
    )(eps_arr, h_t, weight, b2, u)

    # Cheap leading-axis unpack (no column/batch slicing needed: no padding).
    return out[0], out[1], out[2]


if __name__ == "__main__":
    # Small shapes consistent with the module: RNN hidden state -> halting head.
    B, input_size, output_size = 8, 32, 16

    key = jax.random.PRNGKey(0)
    k_x, k_w, k_b, k_u = jax.random.split(key, 4)

    # Deterministic param init mimicking nn.Linear: U(-1/sqrt(in), 1/sqrt(in)).
    bound = 1.0 / (input_size ** 0.5)
    weight = jax.random.uniform(k_w, (input_size, output_size),
                                jnp.float32, -bound, bound)
    bias = jax.random.uniform(k_b, (output_size,), jnp.float32, -bound, bound)
    h_t = jax.random.normal(k_x, (B, input_size), jnp.float32)

    eps = 0.1

    halt, log_pi, neg_log_p = controller_forward(h_t, weight, bias, k_u, eps)
    halt, log_pi, neg_log_p = jax.block_until_ready((halt, log_pi, neg_log_p))

    # Reference probabilities (the sample itself is stochastic, so check the
    # internal consistency of the three returned tensors).
    logits = h_t @ weight + bias
    probs_ref = jax.nn.sigmoid(logits)
    probs_ref = (1.0 - eps) * probs_ref + eps * 0.5

    assert halt.shape == (B, output_size)
    assert log_pi.shape == (B, output_size)
    assert neg_log_p.shape == (B, output_size)
    assert bool(jnp.all((halt == 0.0) | (halt == 1.0)))
    assert jnp.allclose(neg_log_p, -jnp.log(probs_ref), atol=1e-5, rtol=1e-5)
    log_pi_ref = jnp.where(halt > 0.5, jnp.log(probs_ref),
                           jnp.log(1.0 - probs_ref))
    assert jnp.allclose(log_pi, log_pi_ref, atol=1e-5, rtol=1e-5)

    print("KERNEL_OK")
</pallas_src>

<mosaic_0001>
module attributes {stable_mosaic.version = 11 : i64} {
  func.func @_controller_kernel(%arg0: i32, %arg1: memref<1xf32, #tpu.memory_space<smem>>, %arg2: memref<8x32xf32, #tpu.memory_space<vmem>>, %arg3: memref<32x16xf32, #tpu.memory_space<vmem>>, %arg4: memref<1x16xf32, #tpu.memory_space<vmem>>, %arg5: memref<8x16xf32, #tpu.memory_space<vmem>>, %arg6: memref<3x8x16xf32, #tpu.memory_space<vmem>>) attributes {dimension_semantics = [#tpu.dimension_semantics<parallel>], iteration_bounds = array<i64: 1>, scalar_prefetch = 0 : i64, scratch_operands = 0 : i64, tpu.core_type = #tpu.core_type<tc>, window_params = [{transform_indices = @transform_0, window_bounds = array<i64: 1>}, {transform_indices = @transform_1, window_bounds = array<i64: 8, 32>}, {pipeline_mode = #tpu.pipeline_mode<synchronous>, transform_indices = @transform_2, window_bounds = array<i64: 32, 16>}, {pipeline_mode = #tpu.pipeline_mode<synchronous>, transform_indices = @transform_3, window_bounds = array<i64: 1, 16>}, {transform_indices = @transform_4, window_bounds = array<i64: 8, 16>}, {transform_indices = @transform_5, window_bounds = array<i64: 3, 8, 16>}]} {
    %c0 = arith.constant 0 : index
    %c0_0 = arith.constant 0 : index
    %0 = vector.load %arg2[%c0, %c0_0] : memref<8x32xf32, #tpu.memory_space<vmem>>, vector<8x32xf32>
    %c0_1 = arith.constant 0 : index
    %c0_2 = arith.constant 0 : index
    %1 = vector.load %arg3[%c0_1, %c0_2] : memref<32x16xf32, #tpu.memory_space<vmem>>, vector<32x16xf32>
    %cst = arith.constant dense<0.000000e+00> : vector<8x16xf32>
    %2 = tpu.matmul %0, %1, %cst {dimension_numbers = #tpu.dot_dimension_numbers<[1], [0], [0], [1], [0, 0, 1, 1], [], []>} : vector<8x32xf32>, vector<32x16xf32>, vector<8x16xf32> -> vector<8x16xf32>
    %c0_3 = arith.constant 0 : index
    %c0_4 = arith.constant 0 : index
    %3 = vector.load %arg4[%c0_3, %c0_4] : memref<1x16xf32, #tpu.memory_space<vmem>>, vector<1x16xf32>
    %4 = vector.broadcast %3 : vector<1x16xf32> to vector<8x16xf32>
    %5 = arith.addf %2, %4 : vector<8x16xf32>
    %c0_5 = arith.constant 0 : index
    %6 = memref.load %arg1[%c0_5] : memref<1xf32, #tpu.memory_space<smem>>
    %cst_6 = arith.constant 5.000000e-01 : f32
    %7 = vector.broadcast %cst_6 : f32 to vector<8x16xf32>
    %8 = arith.mulf %7, %5 : vector<8x16xf32>
    %9 = math.tanh %8 : vector<8x16xf32>
    %cst_7 = arith.constant 1.000000e+00 : f32
    %10 = vector.broadcast %cst_7 : f32 to vector<8x16xf32>
    %11 = arith.addf %9, %10 : vector<8x16xf32>
    %cst_8 = arith.constant 5.000000e-01 : f32
    %12 = vector.broadcast %cst_8 : f32 to vector<8x16xf32>
    %13 = arith.mulf %12, %11 : vector<8x16xf32>
    %cst_9 = arith.constant 1.000000e+00 : f32
    %14 = arith.subf %cst_9, %6 : f32
    %15 = vector.broadcast %14 : f32 to vector<8x16xf32>
    %16 = arith.mulf %15, %13 : vector<8x16xf32>
    %cst_10 = arith.constant 5.000000e-01 : f32
    %17 = arith.mulf %6, %cst_10 : f32
    %18 = vector.broadcast %17 : f32 to vector<8x16xf32>
    %19 = arith.addf %16, %18 : vector<8x16xf32>
    %c0_11 = arith.constant 0 : index
    %c0_12 = arith.constant 0 : index
    %20 = vector.load %arg5[%c0_11, %c0_12] : memref<8x16xf32, #tpu.memory_space<vmem>>, vector<8x16xf32>
    %21 = arith.cmpf olt, %20, %19 : vector<8x16xf32>
    %22 = arith.extui %21 : vector<8x16xi1> to vector<8x16xi32>
    %23 = arith.sitofp %22 : vector<8x16xi32> to vector<8x16xf32>
    %c0_13 = arith.constant 0 : index
    %c0_14 = arith.constant 0 : index
    %c0_15 = arith.constant 0 : index
    %24 = vector.load %arg6[%c0_13, %c0_14, %c0_15] : memref<3x8x16xf32, #tpu.memory_space<vmem>>, vector<1x8x16xf32>
    %25 = vector.shape_cast %24 : vector<1x8x16xf32> to vector<8x16xf32>
    %26 = vector.shape_cast %23 : vector<8x16xf32> to vector<1x8x16xf32>
    tpu.vector_store %arg6[%c0_13, %c0_14, %c0_15], %26 {strides = array<i32>} : memref<3x8x16xf32, #tpu.memory_space<vmem>>, vector<1x8x16xf32>,
    %27 = math.log %19 : vector<8x16xf32>
    %cst_16 = arith.constant 0.000000e+00 : f32
    %28 = vector.broadcast %cst_16 : f32 to vector<8x16xf32>
    %29 = arith.subf %28, %27 : vector<8x16xf32>
    %c2 = arith.constant 2 : index
    %c0_17 = arith.constant 0 : index
    %c0_18 = arith.constant 0 : index
    %30 = vector.load %arg6[%c2, %c0_17, %c0_18] : memref<3x8x16xf32, #tpu.memory_space<vmem>>, vector<1x8x16xf32>
    %31 = vector.shape_cast %30 : vector<1x8x16xf32> to vector<8x16xf32>
    %32 = vector.shape_cast %29 : vector<8x16xf32> to vector<1x8x16xf32>
    tpu.vector_store %arg6[%c2, %c0_17, %c0_18], %32 {strides = array<i32>} : memref<3x8x16xf32, #tpu.memory_space<vmem>>, vector<1x8x16xf32>,
    %cst_19 = arith.constant 1.000000e+00 : f32
    %33 = vector.broadcast %cst_19 : f32 to vector<8x16xf32>
    %34 = arith.subf %33, %19 : vector<8x16xf32>
    %35 = math.log %34 : vector<8x16xf32>
    %cst_20 = arith.constant 5.000000e-01 : f32
    %36 = vector.broadcast %cst_20 : f32 to vector<8x16xf32>
    %37 = arith.cmpf ogt, %23, %36 : vector<8x16xf32>
    %38 = arith.select %37, %27, %35 : vector<8x16xi1>, vector<8x16xf32>
    %c1 = arith.constant 1 : index
    %c0_21 = arith.constant 0 : index
    %c0_22 = arith.constant 0 : index
    %39 = vector.load %arg6[%c1, %c0_21, %c0_22] : memref<3x8x16xf32, #tpu.memory_space<vmem>>, vector<1x8x16xf32>
    %40 = vector.shape_cast %39 : vector<1x8x16xf32> to vector<8x16xf32>
    %41 = vector.shape_cast %38 : vector<8x16xf32> to vector<1x8x16xf32>
    tpu.vector_store %arg6[%c1, %c0_21, %c0_22], %41 {strides = array<i32>} : memref<3x8x16xf32, #tpu.memory_space<vmem>>, vector<1x8x16xf32>,
    return
  }
  func.func @transform_0(%arg0: i32) -> i32 {
    %c0_i32 = arith.constant 0 : i32
    %c0_i32_0 = arith.constant 0 : i32
    return %c0_i32 : i32
  }
  func.func @transform_1(%arg0: i32) -> (i32, i32) {
    %c0_i32 = arith.constant 0 : i32
    %c0_i32_0 = arith.constant 0 : i32
    return %arg0, %c0_i32 : i32, i32
  }
  func.func @transform_2(%arg0: i32) -> (i32, i32) {
    %c0_i32 = arith.constant 0 : i32
    %c0_i32_0 = arith.constant 0 : i32
    %c0_i32_1 = arith.constant 0 : i32
    return %c0_i32, %c0_i32_0 : i32, i32
  }
  func.func @transform_3(%arg0: i32) -> (i32, i32) {
    %c0_i32 = arith.constant 0 : i32
    %c0_i32_0 = arith.constant 0 : i32
    %c0_i32_1 = arith.constant 0 : i32
    return %c0_i32, %c0_i32_0 : i32, i32
  }
  func.func @transform_4(%arg0: i32) -> (i32, i32) {
    %c0_i32 = arith.constant 0 : i32
    %c0_i32_0 = arith.constant 0 : i32
    return %arg0, %c0_i32 : i32, i32
  }
  func.func @transform_5(%arg0: i32) -> (i32, i32, i32) {
    %c0_i32 = arith.constant 0 : i32
    %c0_i32_0 = arith.constant 0 : i32
    %c0_i32_1 = arith.constant 0 : i32
    return %c0_i32, %arg0, %c0_i32_0 : i32, i32, i32
  }
}

</mosaic_0001>

<bundles_post_ra>
// kernel: tpu_custom_call.1
= control target key start
LH: loop header
LB: loop body
LE: loop exit
PB: predicated region body
PF: predicated region fallthrough
CT: control target
= control target key end

     0   :  { %s208_s0 = inlined_call_operand.<no memory space> [shape: f32[1], index: 0, kind: input, shape index: {}]   ;;  %s209_s1 = inlined_call_operand.vmem [shape: f32[8,32], index: 1, kind: input, shape index: {}]   ;;  %s210_s2 = inlined_call_operand.vmem [shape: f32[32,16], index: 2, kind: input, shape index: {}]   ;;  %s211_s3 = inlined_call_operand.vmem [shape: f32[1,16], index: 3, kind: input, shape index: {}]   ;;  %s212_s4 = inlined_call_operand.vmem [shape: f32[8,16], index: 4, kind: input, shape index: {}]   ;;  %s213_s5 = inlined_call_operand.hbm [shape: f32[3,8,16], index: 5, kind: output, shape index: {}]  }
   0x1   :  { %v26_v0 = vld [vmem:[%s210_s2 + $0x18] sm:$0xff]  ;;  %v25_v1 = vld [vmem:[%s210_s2 + $0x10] sm:$0xff]  ;;  %v24_v2 = vld [vmem:[%s210_s2 + $0x8] sm:$0xff] }
   0x2   :  { %47 = vmatpush.msra.mxu0 %v26_v0 }
   0x3   :  { %11 = vsyncpa [#allocation4], 0  ;;  %v23_v3 = vld [vmem:[%s210_s2] sm:$0xff]  ;;  %vm31_vm0 = vcmask 261120   ;;  %s60_s2 = ssub.f32 1.0, %s208_s0  ;;  %vm70_vm1 = vcmask 130048  }
   0x4   :  { %48 = vmatpush.msra.mxu0 %v25_v1  ;;  %v22_v4 = vld [vmem:[%s209_s1] sm:$0xff]  ;;  %s63_s1 = smul.f32 0.5, %s208_s0  ;;  %v141_v18 = vmov 0.0   ;;  %s142_s0 = smov [#allocation3]  }
   0x5   :  { %v108_v5 = vld [vmem:[%s211_s3] ss:$0 sm:$0xff]  ;;  %v61_v11 = vstv %s60_s2  ;;  %s88_s10 = sshll.u32 %s142_s0, 4  ;;  %s90_s13 = sshll.u32 %s213_s5, 4  ;;  %s89_s10 = int_to_ptr.vmem [resolvable:$true] %s88_s10  ;;  %s91_s13 = int_to_ptr.hbm [resolvable:$true] %s90_s13 }
   0x6   :  { %49 = vmatpush.msra.mxu0 %v24_v2  ;;  %v64_v13 = vstv %s63_s1  ;;  %v66_v15 = vld [vmem:[%s212_s4] sm:$0xff]  ;;  %s143_s4 = smov 128   ;;  %s144_s14 = smov 8  }
   0x8   :  { %50 = vmatpush.msra.mxu0 %v23_v3 }
   0x9   :  { %102 = vmatmul.msk.f32.vlgmr.msra.gmra.mxu0 %vm31_vm0, %v22_v4 }
  0x86   :  { %v52_v6 = vpop.f32.mrf.mxu0 }
  0x87   :  { %v53_v7 = vadd.f32 %v108_v5, %v52_v6 }
  0x89   :  { %v56_v8 = vmul.f32 0.5, %v53_v7 }
  0x8b   :  { %109 = vtanh.f32 %v56_v8 }
  0x91   :  { %v110_v9 = vpop.eup %109 }
  0x92   :  { %v58_v10 = vadd.f32 1.0, %v110_v9 }
  0x94   :  { %v59_v12 = vmul.f32 0.5, %v58_v10 }
  0x96   :  { %v62_v14 = vmul.f32 %v61_v11, %v59_v12 }
  0x98   :  { %v65_v16 = vadd.f32 %v64_v13, %v62_v14 }
  0x9a   :  { %vm67_vm2 = vcmp.lt.f32.partialorder %v66_v15, %v65_v16  ;;  %111 = vlog2.f32 %v65_v16  ;;  %v77_v17 = vsub.f32 1.0, %v65_v16 }
  0x9b   :  { %v103_v19 = vsel %vm67_vm2, 1.0, %v141_v18 }
  0x9c   :  { %71 = vst.msk [vmem:[#allocation3] sm:$0xff] %vm70_vm1, %v103_v19  ;;  %113 = vlog2.f32 %v77_v17  ;;  %vm80_vm3 = vcmp.gt.f32.partialorder %v103_v19, 0.5 }
  0xa0   :  { %v112_v20 = vpop.eup %111 }
  0xa1   :  { %v73_v21 = vmul.f32 0.6931472, %v112_v20 }
  0xa2   :  { %v114_v22 = vpop.eup %113 }
  0xa3   :  { %v74_v23 = vsub.f32 0.0, %v73_v21  ;;  %v79_v24 = vmul.f32 0.6931472, %v114_v22 }
  0xa5   :  { %76 = vst.msk [vmem:[#allocation3 + $0x10] sm:$0xff] %vm70_vm1, %v74_v23  ;;  %v81_v25 = vsel %vm80_vm3, %v73_v21, %v79_v24 }
  0xa6   :  { %83 = vst.msk [vmem:[#allocation3 + $0x8] sm:$0xff] %vm70_vm1, %v81_v25 }
  0xa7   :  { %96 = dma.vmem_to_hbm [thread:$0]  %s89_s10, 384, %s91_s13, [#allocation4], %s143_s4, %s143_s4, %s144_s14  }
  0xa8   :  { %139 = dma.done.wait [#allocation4], 384  }
  0xa9   :  { %140 = vsyncadd [#allocation4], 4294966912 }
  0xaa   :  { %101 = vsyncpa [#allocation4], 1 }

</bundles_post_ra>
